<compile_context>
chip_gen: v7x
topology: tpu7x:2x2x1
jax: 0.10.0
libtpu: 0.0.40
codegen_flags: <defaults>
</compile_context>

<pallas_src>
import functools

import jax
import jax.numpy as jnp
from jax.experimental import pallas as pl
from jax.experimental.pallas import tpu as pltpu


# above every scoped default, under v7x's 64 MiB physical VMEM
_VMEM_LIMIT = 48 * 1024 * 1024


def _pick_group_tile(num_graphs, interval, target_rows=512):
    """# interval-groups per GINE grid step.  The fused logits output is stored
    lane-dense as (B, N, L), so TGI*interval must be a multiple of 128
    (unmasked vst) or cover the whole sequence."""
    cands = [t for t in range(1, num_graphs + 1)
             if num_graphs % t == 0 and (t * interval) % 128 == 0]
    if not cands:
        return num_graphs
    reach = [t for t in cands if t * interval >= target_rows]
    return reach[0] if reach else cands[-1]


# ----------------------------------------------------------------------------
# fused encoder + temporal mean pooling
#   x (B, N, L, D) -> h (B, N, L, H), pooled (B, G, N, H)
# ----------------------------------------------------------------------------
def _encode_pool_kernel(x_ref, w_ref, b_ref, h_ref, pool_ref, *, interval, use_mxu):
    _, N, L, D = x_ref.shape
    H = w_ref.shape[1]
    G = L // interval
    x = x_ref[0].reshape(N * L, D)
    w = w_ref[...]
    b = b_ref[...]                                        # (1, H)
    if use_mxu:
        h = jnp.dot(x.astype(jnp.bfloat16), w.astype(jnp.bfloat16),
                    preferred_element_type=jnp.float32) + b
    else:
        # tiny-K encoder (input_dim == 1): pure VPU broadcast-multiply-add.
        h = x[:, 0:1] * w[0:1, :] + b
        for d in range(1, D):
            h = h + x[:, d:d + 1] * w[d:d + 1, :]
    h3 = h.reshape(N, L, H)
    h_ref[0] = h3.astype(h_ref.dtype)
    # fused per-interval mean pooling -> (G, N, H); no extra HBM round trip of h.
    inv = 1.0 / float(interval)
    for g in range(G):
        pool_ref[0, g] = (jnp.sum(h3[:, g * interval:(g + 1) * interval, :],
                                  axis=1) * inv).astype(pool_ref.dtype)


def encode_pool(x4, w_enc, b_enc, *, interval):
    B, N, L, D = x4.shape
    H = w_enc.shape[1]
    G = L // interval
    kern = functools.partial(_encode_pool_kernel, interval=interval, use_mxu=(D >= 8))
    return pl.pallas_call(
        kern,
        out_shape=(jax.ShapeDtypeStruct((B, N, L, H), jnp.float32),
                   jax.ShapeDtypeStruct((B, G, N, H), jnp.float32)),
        grid=(B,),
        in_specs=[pl.BlockSpec((1, N, L, D), lambda b: (b, 0, 0, 0)),
                  pl.BlockSpec((D, H), lambda b: (0, 0)),
                  pl.BlockSpec((1, H), lambda b: (0, 0))],
        out_specs=(pl.BlockSpec((1, N, L, H), lambda b: (b, 0, 0, 0)),
                   pl.BlockSpec((1, G, N, H), lambda b: (b, 0, 0, 0))),
        compiler_params=pltpu.CompilerParams(
            dimension_semantics=("parallel",),
            vmem_limit_bytes=_VMEM_LIMIT),
    )(x4, w_enc, b_enc)


# ----------------------------------------------------------------------------
# self-attention graph learner: fused QK matmul, softmax, symmetrize,
# self-loop add, and regularization losses
# ----------------------------------------------------------------------------
def _graph_kernel(x_ref, wqk_ref, adj_ref, reg_ref, *, scale):
    _, G, N, H = x_ref.shape
    x = x_ref[0]                                          # (G, N, H) f32
    xf = x.reshape(G * N, H)
    # fused Wq|Wk: one bf16 MXU matmul, f32 accumulate.
    qk = jnp.dot(xf.astype(jnp.bfloat16), wqk_ref[...].astype(jnp.bfloat16),
                 preferred_element_type=jnp.float32)      # (G*N, 2H)
    q = qk[:, :H].reshape(G, N, H)
    k = qk[:, H:].reshape(G, N, H)
    dn = (((2,), (2,)), ((0,), (0,)))                     # batched over G, contract H
    s = jax.lax.dot_general(q.astype(jnp.bfloat16), k.astype(jnp.bfloat16), dn,
                            preferred_element_type=jnp.float32) * scale
    s = s - jnp.max(s, axis=-1, keepdims=True)
    e = jnp.exp(s)
    a = e * pl.reciprocal(jnp.sum(e, axis=-1, keepdims=True), approx=True)
    a = 0.5 * (a + jnp.swapaxes(a, 1, 2))                 # undirected_graph=True

    # fused remove + add self loops (fill=1) directly on the stored adjacency
    rows = jax.lax.broadcasted_iota(jnp.int32, (N, N), 0)
    cols = jax.lax.broadcasted_iota(jnp.int32, (N, N), 1)
    eye = (rows == cols).astype(jnp.float32)
    adj_ref[0] = (a * (1.0 - eye) + eye).astype(adj_ref.dtype)

    # fused graph regularization (on the pre-self-loop adjacency, as in ref)
    deg = jnp.sum(a, axis=-1)                             # (G, N)
    xx = jnp.sum(x * x, axis=-1)                          # (G, N)
    gram = jax.lax.dot_general(x, x, dn, preferred_element_type=jnp.float32)
    inv_n2 = 1.0 / float(N * N)
    fs = (jnp.sum(deg * xx, axis=-1, keepdims=True)
          - jnp.sum(jnp.sum(a * gram, axis=-1), axis=-1, keepdims=True)) * inv_n2
    dg = (-1.0 / float(N)) * jnp.sum(jnp.log(deg), axis=-1, keepdims=True)
    sp = jnp.sum(jnp.sum(a * a, axis=-1), axis=-1, keepdims=True) * inv_n2
    reg_ref[0] = jnp.concatenate([fs, dg, sp], axis=1).astype(reg_ref.dtype)


def learn_graph(x_pool, wqk):
    """(B, G, N, H) -> adjacency-with-self-loops (B, G, N, N), reg (B, G, 3)."""
    B, G, N, H = x_pool.shape
    kern = functools.partial(_graph_kernel, scale=1.0 / float(H) ** 0.5)
    return pl.pallas_call(
        kern,
        out_shape=(jax.ShapeDtypeStruct((B, G, N, N), jnp.float32),
                   jax.ShapeDtypeStruct((B, G, 3), jnp.float32)),
        grid=(B,),
        in_specs=[pl.BlockSpec((1, G, N, H), lambda b: (b, 0, 0, 0)),
                  pl.BlockSpec((H, 2 * H), lambda b: (0, 0))],
        out_specs=(pl.BlockSpec((1, G, N, N), lambda b: (b, 0, 0, 0)),
                   pl.BlockSpec((1, G, 3), lambda b: (b, 0, 0))),
        compiler_params=pltpu.CompilerParams(
            dimension_semantics=("parallel",),
            vmem_limit_bytes=_VMEM_LIMIT),
    )(x_pool, wqk)


# ----------------------------------------------------------------------------
# fused multi-layer dense GINE + LeakyReLU + decoder Linear(H -> 1)
# ----------------------------------------------------------------------------
def _gine_dec_kernel(x_ref, adj_ref, we_ref, be_ref, wg_ref, bg_ref, wd_ref, bd_ref,
                     out_ref, *, interval, num_layers):
    _, TGI, N, _ = adj_ref.shape
    H = we_ref.shape[1]
    T = TGI * interval

    # Reorient the small adjacency once per grid step to (node_i, graph, node_j)
    # with a plain 2-D transpose (valid because the adjacency is symmetrized
    # with a unit diagonal, hence symmetric in (i, j)).
    adj_igj = adj_ref[0].reshape(TGI * N, N).T.reshape(N, TGI, N)

    we_b = we_ref[...].reshape(1, 1, 1, H)                # hoisted broadcast operands
    be_b = be_ref[...].reshape(1, 1, 1, H)

    x = x_ref[0]                                          # (N, T, H) f32, node-major
    for layer in range(num_layers):
        x_r = x.reshape(N, TGI, interval, H)
        acc = jnp.zeros((N, TGI, interval, H), jnp.float32)
        # GINEConv (dense, eps=0): out_i = nn(x_i + sum_j relu(x_j + lin(A_ij)))
        # adjacency = softmax weights + self loops -> strictly positive, so the
        # sparse reference's (A != 0) edge mask is redundant here.
        # The O(N^2*T*H) message tensor is never materialised: accumulate per
        # source node j.
        # TODO(synk): for large num_nodes switch this static unroll to a
        #             chunked lax.fori_loop over source nodes.
        for j in range(N):
            a_j = adj_igj[:, :, j:j + 1].reshape(N, TGI, 1, 1)
            edge_j = a_j * we_b + be_b                    # (N, TGI, 1, H)
            acc = acc + jnp.maximum(x_r[j:j + 1] + edge_j, 0.0)
        # single large, aligned bf16 MXU matmul per layer (wg hoisted out of
        # the interval loop), LeakyReLU; eval mode -> no dropout.
        agg = (x_r + acc).reshape(N * T, H)
        out = jnp.dot(agg.astype(jnp.bfloat16), wg_ref[layer].astype(jnp.bfloat16),
                      preferred_element_type=jnp.float32) + bg_ref[layer]
        out = jnp.where(out > 0, out, 0.01 * out)
        x = out.reshape(N, T, H)

    # fused decoder Linear(H -> 1): VPU reduction, lane-dense (N, T) store
    dec = jnp.sum(x * wd_ref[...], axis=-1) + bd_ref[...]
    out_ref[0] = dec.astype(out_ref.dtype)


def gine_decode(h, adj_sl, w_edge, b_edge, wg_stack, bg_stack, w_dec_row, b_dec,
                *, interval, graphs_per_step=None):
    """h: (B, N, L, H) node-major; adj_sl: (B, G, N, N) with self loops.
    Returns lane-dense logits (B, N, L)."""
    B, N, L, H = h.shape
    G = L // interval
    num_layers = wg_stack.shape[0]
    TGI = graphs_per_step or _pick_group_tile(G, interval)
    kern = functools.partial(_gine_dec_kernel, interval=interval,
                             num_layers=num_layers)
    return pl.pallas_call(
        kern,
        out_shape=jax.ShapeDtypeStruct((B, N, L), jnp.float32),
        grid=(B, G // TGI),
        in_specs=[pl.BlockSpec((1, N, TGI * interval, H), lambda b, t: (b, 0, t, 0)),
                  # per-interval adjacency is read straight from (B, G, N, N):
                  # the interval-times repeat is never materialised in HBM.
                  pl.BlockSpec((1, TGI, N, N), lambda b, t: (b, t, 0, 0)),
                  pl.BlockSpec((1, H), lambda b, t: (0, 0)),
                  pl.BlockSpec((1, H), lambda b, t: (0, 0)),
                  pl.BlockSpec((num_layers, H, H), lambda b, t: (0, 0, 0)),
                  pl.BlockSpec((num_layers, 1, H), lambda b, t: (0, 0, 0)),
                  pl.BlockSpec((1, H), lambda b, t: (0, 0)),
                  pl.BlockSpec((1, 1), lambda b, t: (0, 0))],
        out_specs=pl.BlockSpec((1, N, TGI * interval), lambda b, t: (b, 0, t)),
        compiler_params=pltpu.CompilerParams(
            dimension_semantics=("parallel", "parallel"),
            vmem_limit_bytes=_VMEM_LIMIT),
    )(h, adj_sl, w_edge, b_edge, wg_stack, bg_stack, w_dec_row, b_dec)


# ----------------------------------------------------------------------------
# parameter init + forward glue (plain JAX, no HBM round trips beyond the
# three kernel boundaries)
# ----------------------------------------------------------------------------
def init_params(key, d_in, hidden, num_gnn_layers):
    ks = jax.random.split(key, 6)
    s = 0.1
    wq = s * jax.random.normal(ks[1], (hidden, hidden), jnp.float32)
    wk = s * jax.random.normal(ks[2], (hidden, hidden), jnp.float32)
    return {
        "w_enc": s * jax.random.normal(ks[0], (d_in, hidden), jnp.float32),
        "b_enc": jnp.zeros((1, hidden), jnp.float32),
        "wqk": jnp.concatenate([wq, wk], axis=1),          # fused (H, 2H)
        "w_edge": s * jax.random.normal(ks[3], (1, hidden), jnp.float32),
        "b_edge": jnp.zeros((1, hidden), jnp.float32),
        "w_dec_row": s * jax.random.normal(ks[4], (1, hidden), jnp.float32),
        "b_dec": jnp.zeros((1, 1), jnp.float32),
        "wg_stack": s * jax.random.normal(
            ks[5], (num_gnn_layers, hidden, hidden), jnp.float32),
        "bg_stack": jnp.zeros((num_gnn_layers, 1, hidden), jnp.float32),
    }


def tsadc_forward(x_data, params, *, num_nodes, hidden_dim, interval, input_dim):
    """Test-mode TSADC forward (single step_in_seq chunk = whole sequence)."""
    assert input_dim == 1  # test-mode path reshapes with add_dim = 1
    BN, L, D = x_data.shape
    B = BN // num_nodes
    N = num_nodes
    x_orig = x_data                                       # test mode: x = x_true

    # --- S4Model stand-in (linear encoder) fused with temporal mean pooling ---
    # TODO(synk): full S4 SSM layers not reproduced (see header).
    x4 = x_data.reshape(B, N, L, D)                       # free reshape, node-major
    h, x_pool = encode_pool(x4, params["w_enc"], params["b_enc"], interval=interval)

    # --- graph learner + fused self-loops + fused reg losses ---
    # residual_weight == 0 -> adj = attn_weight (knn_graph output unused)
    # TODO(synk): prune_graph(method='thresh', thresh=None) left as identity.
    adj_sl, reg = learn_graph(x_pool, params["wqk"])      # (B,G,N,N), (B,G,3)
    loss_graph = (0.05 * jnp.mean(reg[:, :, 0])           # feature smoothing
                  + 0.05 * jnp.mean(reg[:, :, 1])         # degree
                  + 0.05 * jnp.mean(reg[:, :, 2]))        # sparse

    # --- fused multi-layer GINE + LeakyReLU + decoder Linear(H -> 1) ---
    logits3 = gine_decode(h, adj_sl, params["w_edge"], params["b_edge"],
                          params["wg_stack"], params["bg_stack"],
                          params["w_dec_row"], params["b_dec"],
                          interval=interval)
    logits = logits3.reshape(BN, L, input_dim)            # free reshape, no transpose

    rec_ind_loss = jnp.mean((logits - x_orig) ** 2)       # nn.MSELoss
    return logits, loss_graph, rec_ind_loss


def make_mask(key, L, N, r):
    # TODO(synk): exact mask_RandM semantics unavailable; r random timesteps zeroed.
    idx = jax.random.permutation(key, L)[:r]
    return jnp.ones((L, N), jnp.float32).at[idx].set(0.0)


# ----------------------------------------------------------------------------
if __name__ == "__main__":
    B, N, L, D, H, INTERVAL = 2, 4, 16, 1, 32, 4   # batch, nodes, seq, input, hidden
    key = jax.random.PRNGKey(0)
    k_x, k_p, k_m = jax.random.split(key, 3)

    x_data = jax.random.normal(k_x, (B * N, L, D), jnp.float32)   # like data.x
    params = init_params(k_p, D, H, num_gnn_layers=2)

    logits, loss_graph, rec_loss = tsadc_forward(
        x_data, params, num_nodes=N, hidden_dim=H, interval=INTERVAL, input_dim=D)

    # test-mode auxiliary outputs (mask_sampled, pred_x); sampled_x skipped (see TODO).
    mask = make_mask(k_m, L, N, r=4)                               # (L, N)
    mask_sampled = jnp.broadcast_to(mask.T[None], (B, N, L)).reshape(B * N, L, 1)
    pred_x = x_data

    jax.block_until_ready((logits, loss_graph, rec_loss, mask_sampled, pred_x))
    assert logits.shape == (B * N, L, D)
    assert mask_sampled.shape == (B * N, L, 1)
    print("KERNEL_OK")
</pallas_src>

<mosaic_0001>
module attributes {stable_mosaic.version = 11 : i64} {
  func.func @_encode_pool_kernel(%arg0: i32, %arg1: memref<1x4x16x1xf32, #tpu.memory_space<vmem>>, %arg2: memref<1x32xf32, #tpu.memory_space<vmem>>, %arg3: memref<1x32xf32, #tpu.memory_space<vmem>>, %arg4: memref<1x4x16x32xf32, #tpu.memory_space<vmem>>, %arg5: memref<1x4x4x32xf32, #tpu.memory_space<vmem>>) attributes {dimension_semantics = [#tpu.dimension_semantics<parallel>], iteration_bounds = array<i64: 2>, scalar_prefetch = 0 : i64, scratch_operands = 0 : i64, tpu.core_type = #tpu.core_type<tc>, window_params = [{transform_indices = @transform_0, window_bounds = array<i64: 1, 4, 16, 1>}, {pipeline_mode = #tpu.pipeline_mode<synchronous>, transform_indices = @transform_1, window_bounds = array<i64: 1, 32>}, {pipeline_mode = #tpu.pipeline_mode<synchronous>, transform_indices = @transform_2, window_bounds = array<i64: 1, 32>}, {transform_indices = @transform_3, window_bounds = array<i64: 1, 4, 16, 32>}, {transform_indices = @transform_4, window_bounds = array<i64: 1, 4, 4, 32>}]} {
    %c0 = arith.constant 0 : index
    %c0_0 = arith.constant 0 : index
    %c0_1 = arith.constant 0 : index
    %c0_2 = arith.constant 0 : index
    %0 = vector.load %arg1[%c0, %c0_0, %c0_1, %c0_2] : memref<1x4x16x1xf32, #tpu.memory_space<vmem>>, vector<1x4x16x1xf32>
    %1 = vector.shape_cast %0 : vector<1x4x16x1xf32> to vector<4x16x1xf32>
    %2 = vector.shape_cast %1 : vector<4x16x1xf32> to vector<64x1xf32>
    %c0_3 = arith.constant 0 : index
    %c0_4 = arith.constant 0 : index
    %3 = vector.load %arg2[%c0_3, %c0_4] : memref<1x32xf32, #tpu.memory_space<vmem>>, vector<1x32xf32>
    %c0_5 = arith.constant 0 : index
    %c0_6 = arith.constant 0 : index
    %4 = vector.load %arg3[%c0_5, %c0_6] : memref<1x32xf32, #tpu.memory_space<vmem>>, vector<1x32xf32>
    %5 = vector.broadcast %2 : vector<64x1xf32> to vector<64x32xf32>
    %6 = vector.broadcast %3 : vector<1x32xf32> to vector<64x32xf32>
    %7 = arith.mulf %5, %6 : vector<64x32xf32>
    %8 = vector.broadcast %4 : vector<1x32xf32> to vector<64x32xf32>
    %9 = arith.addf %7, %8 : vector<64x32xf32>
    %10 = vector.shape_cast %9 : vector<64x32xf32> to vector<4x16x32xf32>
    %c0_7 = arith.constant 0 : index
    %c0_8 = arith.constant 0 : index
    %c0_9 = arith.constant 0 : index
    %c0_10 = arith.constant 0 : index
    %11 = vector.load %arg4[%c0_7, %c0_8, %c0_9, %c0_10] : memref<1x4x16x32xf32, #tpu.memory_space<vmem>>, vector<1x4x16x32xf32>
    %12 = vector.shape_cast %11 : vector<1x4x16x32xf32> to vector<4x16x32xf32>
    %13 = vector.shape_cast %10 : vector<4x16x32xf32> to vector<1x4x16x32xf32>
    tpu.vector_store %arg4[%c0_7, %c0_8, %c0_9, %c0_10], %13 {strides = array<i32>} : memref<1x4x16x32xf32, #tpu.memory_space<vmem>>, vector<1x4x16x32xf32>,
    %14 = vector.extract_strided_slice %10 {offsets = [0, 0, 0], sizes = [4, 4, 32], strides = [1, 1, 1]} : vector<4x16x32xf32> to vector<4x4x32xf32>
    %cst = arith.constant dense<0.000000e+00> : vector<4x32xf32>
    %15 = vector.multi_reduction <add>, %14, %cst [1] : vector<4x4x32xf32> to vector<4x32xf32>
    %cst_11 = arith.constant 2.500000e-01 : f32
    %16 = vector.broadcast %cst_11 : f32 to vector<4x32xf32>
    %17 = arith.mulf %15, %16 : vector<4x32xf32>
    %c0_12 = arith.constant 0 : index
    %c0_13 = arith.constant 0 : index
    %c0_14 = arith.constant 0 : index
    %c0_15 = arith.constant 0 : index
    %18 = vector.load %arg5[%c0_12, %c0_13, %c0_14, %c0_15] : memref<1x4x4x32xf32, #tpu.memory_space<vmem>>, vector<1x1x4x32xf32>
    %19 = vector.shape_cast %18 : vector<1x1x4x32xf32> to vector<4x32xf32>
    %20 = vector.shape_cast %17 : vector<4x32xf32> to vector<1x1x4x32xf32>
    tpu.vector_store %arg5[%c0_12, %c0_13, %c0_14, %c0_15], %20 {strides = array<i32>} : memref<1x4x4x32xf32, #tpu.memory_space<vmem>>, vector<1x1x4x32xf32>,
    %21 = vector.extract_strided_slice %10 {offsets = [0, 4, 0], sizes = [4, 4, 32], strides = [1, 1, 1]} : vector<4x16x32xf32> to vector<4x4x32xf32>
    %cst_16 = arith.constant dense<0.000000e+00> : vector<4x32xf32>
    %22 = vector.multi_reduction <add>, %21, %cst_16 [1] : vector<4x4x32xf32> to vector<4x32xf32>
    %cst_17 = arith.constant 2.500000e-01 : f32
    %23 = vector.broadcast %cst_17 : f32 to vector<4x32xf32>
    %24 = arith.mulf %22, %23 : vector<4x32xf32>
    %c0_18 = arith.constant 0 : index
    %c1 = arith.constant 1 : index
    %c0_19 = arith.constant 0 : index
    %c0_20 = arith.constant 0 : index
    %25 = vector.load %arg5[%c0_18, %c1, %c0_19, %c0_20] : memref<1x4x4x32xf32, #tpu.memory_space<vmem>>, vector<1x1x4x32xf32>
    %26 = vector.shape_cast %25 : vector<1x1x4x32xf32> to vector<4x32xf32>
    %27 = vector.shape_cast %24 : vector<4x32xf32> to vector<1x1x4x32xf32>
    tpu.vector_store %arg5[%c0_18, %c1, %c0_19, %c0_20], %27 {strides = array<i32>} : memref<1x4x4x32xf32, #tpu.memory_space<vmem>>, vector<1x1x4x32xf32>,
    %28 = vector.extract_strided_slice %10 {offsets = [0, 8, 0], sizes = [4, 4, 32], strides = [1, 1, 1]} : vector<4x16x32xf32> to vector<4x4x32xf32>
    %cst_21 = arith.constant dense<0.000000e+00> : vector<4x32xf32>
    %29 = vector.multi_reduction <add>, %28, %cst_21 [1] : vector<4x4x32xf32> to vector<4x32xf32>
    %cst_22 = arith.constant 2.500000e-01 : f32
    %30 = vector.broadcast %cst_22 : f32 to vector<4x32xf32>
    %31 = arith.mulf %29, %30 : vector<4x32xf32>
    %c0_23 = arith.constant 0 : index
    %c2 = arith.constant 2 : index
    %c0_24 = arith.constant 0 : index
    %c0_25 = arith.constant 0 : index
    %32 = vector.load %arg5[%c0_23, %c2, %c0_24, %c0_25] : memref<1x4x4x32xf32, #tpu.memory_space<vmem>>, vector<1x1x4x32xf32>
    %33 = vector.shape_cast %32 : vector<1x1x4x32xf32> to vector<4x32xf32>
    %34 = vector.shape_cast %31 : vector<4x32xf32> to vector<1x1x4x32xf32>
    tpu.vector_store %arg5[%c0_23, %c2, %c0_24, %c0_25], %34 {strides = array<i32>} : memref<1x4x4x32xf32, #tpu.memory_space<vmem>>, vector<1x1x4x32xf32>,
    %35 = vector.extract_strided_slice %10 {offsets = [0, 12, 0], sizes = [4, 4, 32], strides = [1, 1, 1]} : vector<4x16x32xf32> to vector<4x4x32xf32>
    %cst_26 = arith.constant dense<0.000000e+00> : vector<4x32xf32>
    %36 = vector.multi_reduction <add>, %35, %cst_26 [1] : vector<4x4x32xf32> to vector<4x32xf32>
    %cst_27 = arith.constant 2.500000e-01 : f32
    %37 = vector.broadcast %cst_27 : f32 to vector<4x32xf32>
    %38 = arith.mulf %36, %37 : vector<4x32xf32>
    %c0_28 = arith.constant 0 : index
    %c3 = arith.constant 3 : index
    %c0_29 = arith.constant 0 : index
    %c0_30 = arith.constant 0 : index
    %39 = vector.load %arg5[%c0_28, %c3, %c0_29, %c0_30] : memref<1x4x4x32xf32, #tpu.memory_space<vmem>>, vector<1x1x4x32xf32>
    %40 = vector.shape_cast %39 : vector<1x1x4x32xf32> to vector<4x32xf32>
    %41 = vector.shape_cast %38 : vector<4x32xf32> to vector<1x1x4x32xf32>
    tpu.vector_store %arg5[%c0_28, %c3, %c0_29, %c0_30], %41 {strides = array<i32>} : memref<1x4x4x32xf32, #tpu.memory_space<vmem>>, vector<1x1x4x32xf32>,
    return
  }
  func.func @transform_0(%arg0: i32) -> (i32, i32, i32, i32) {
    %c0_i32 = arith.constant 0 : i32
    %c0_i32_0 = arith.constant 0 : i32
    %c0_i32_1 = arith.constant 0 : i32
    %c0_i32_2 = arith.constant 0 : i32
    return %arg0, %c0_i32, %c0_i32_0, %c0_i32_1 : i32, i32, i32, i32
  }
  func.func @transform_1(%arg0: i32) -> (i32, i32) {
    %c0_i32 = arith.constant 0 : i32
    %c0_i32_0 = arith.constant 0 : i32
    %c0_i32_1 = arith.constant 0 : i32
    return %c0_i32, %c0_i32_0 : i32, i32
  }
  func.func @transform_2(%arg0: i32) -> (i32, i32) {
    %c0_i32 = arith.constant 0 : i32
    %c0_i32_0 = arith.constant 0 : i32
    %c0_i32_1 = arith.constant 0 : i32
    return %c0_i32, %c0_i32_0 : i32, i32
  }
  func.func @transform_3(%arg0: i32) -> (i32, i32, i32, i32) {
    %c0_i32 = arith.constant 0 : i32
    %c0_i32_0 = arith.constant 0 : i32
    %c0_i32_1 = arith.constant 0 : i32
    %c0_i32_2 = arith.constant 0 : i32
    return %arg0, %c0_i32, %c0_i32_0, %c0_i32_1 : i32, i32, i32, i32
  }
  func.func @transform_4(%arg0: i32) -> (i32, i32, i32, i32) {
    %c0_i32 = arith.constant 0 : i32
    %c0_i32_0 = arith.constant 0 : i32
    %c0_i32_1 = arith.constant 0 : i32
    %c0_i32_2 = arith.constant 0 : i32
    return %arg0, %c0_i32, %c0_i32_0, %c0_i32_1 : i32, i32, i32, i32
  }
}

</mosaic_0001>

<bundles_post_ra>
// kernel: tpu_custom_call.1
= control target key start
LH: loop header
LB: loop body
LE: loop exit
PB: predicated region body
PF: predicated region fallthrough
CT: control target
= control target key end

     0   :  { %10 = vsyncpa [#allocation3], 0  ;;  %s1080_s0 = inlined_call_operand.vmem [shape: f32[2,4,16,1], index: 0, kind: input, shape index: {}]   ;;  %s1081_s1 = inlined_call_operand.vmem [shape: f32[1,32], index: 1, kind: input, shape index: {}]   ;;  %s1082_s2 = inlined_call_operand.vmem [shape: f32[1,32], index: 2, kind: input, shape index: {}]   ;;  %s1083_s3 = inlined_call_operand.hbm [shape: f32[2,4,16,32], index: 3, kind: output, shape index: {0}]   ;;  %s1084_s4 = inlined_call_operand.hbm [shape: f32[2,4,4,32], index: 4, kind: output, shape index: {1}]  }
   0x1   :  { %12 = vsyncpa [#allocation3 + $0x1], 0 }
   0x2   :  { %13 = vsyncpa [#allocation5], 0 }
   0x3   :  { %15 = vsyncpa [#allocation5 + $0x1], 0  ;;  %s821_s15 = smov 0   ;;  %s823_s16 = smov 0  }
   0x4   :  { %s825_s17 = smov 0   ;;  %s827_s18 = smov 0  }
   0x5 LB: > { %s842_s19 = sadd.s32 4294967295, %s787_s18   ;;  %s618_s20 = sadd.s32 4294967294, %s787_s18   ;;  %s787_s18 = sphi %s827_s18, %s1090_s18   ;;  %s783_s17 = sphi %s825_s17, %s1089_s17   ;;  %s779_s16 = sphi %s823_s16, %s1088_s16   ;;  %s775_s15 = sphi %s821_s15, %s1087_s15  }
   0x6   : > { %s846_s21 = sadd.s32 1, %s787_s18   ;;  %s96_s22 = sadd.s32 1, %s783_s17 }
   0x7   : > { %s93_s23 = ssub.s32 %s787_s18, %s846_s21  ;;  %p106_p0 = scmp.ne.s32.totalorder %s783_s17, %s779_s16 }
   0x8   : > { %p94_p1 = scmp.eq.s32.totalorder %s93_s23, 0  ;;  %p107_p2 = scmp.eq.s32.totalorder %s842_s19, 1 }
   0x9   : > { %p112_p3 = scmp.ne.s32.totalorder %s779_s16, %s775_s15  ;;  %p113_p4 = scmp.eq.s32.totalorder %s618_s20, 1 }
   0xa   : > { %s857_s24 = scalar_select %p94_p1, %s783_s17, %s96_s22  }
   0xb   : > { %p859_p5 = por %p107_p2, %p106_p0  ;;  %p863_p6 = por %p113_p4, %p112_p3 }
   0xc   : > { %p621_p7 = scmp.ge.s32.totalorder %s787_s18, 1  ;;  %p171_p8 = scmp.lt.s32.totalorder %s787_s18, 3 }
   0xe   : > { %p172_p9 = pnand %p621_p7, %p171_p8 }
   0xf   : > { %p202_p10 = scmp.lt.s32.totalorder (!%p172_p9), %s842_s19, 1  ;;  %v789_v0 = vmov (!%p172_p9), 0   ;;  %s875_s6 = sand.u32 (!%p172_p9), 1, %s779_s16   ;;  %v880_v9 = vld [vmem:[%s1081_s1] ss:$0 sm:$0xff] (!%p172_p9)  ;;  %vm285_vm0 = vcmask (!%p172_p9), 261120  }
  0x10   : > { %175 = sbr.rel (%p172_p9) target bundleno = 232 (0xe8), region = 32  ;;  %692 = vset.pattern.permute.xlu1 (!%p172_p9), %v789_v0  ;;  %691 = vset.pattern.permute.xlu0 (!%p172_p9), %v789_v0  ;;  %s622_s9 = sshll.u32 (!%p172_p9), %s875_s6, 6  ;;  %v886_v10 = vld [vmem:[%s1082_s2] ss:$0 sm:$0xff] (!%p172_p9)  ;;  %vm294_vm1 = vcmask (!%p172_p9), 257024   ;;  %vm331_vm2 = vcmask (!%p172_p9), 1041409  }
  0x11   : > { %s892_s12 = scalar_lea.vmem (!%p172_p9), [#allocation2], %s622_s9  ;;  %s640_s13 = sshll.u32 (!%p172_p9), %s842_s19, 10 }
  0x12   : > { %s508_s14 = sshll.u32 (!%p172_p9), %s892_s12, 4  ;;  %s947_s23 = scalar_lea.hbm (!%p172_p9), %s1083_s3, %s640_s13  ;;  %s949_s14 = int_to_ptr.vmem [resolvable:$true] %s508_s14 }
  0x13   : > { %s790_s29 = smov (!%p172_p9), [#allocation2]  }
  0x14   : > { %s697_s30 = sshll.u32 (!%p172_p9), %s790_s29, 4  ;;  %s698_s30 = int_to_ptr.vmem [resolvable:$false] %s697_s30 }
  0x15   : > { %p700_p0 = scmp.lt.s32.totalorder (!%p172_p9), %s949_s14, %s698_s30 }
  0x17   : > { %s203_s27 = scalar_select %p202_p10, %s842_s19, 1 }
  0x19   : > { %s639_s28 = sshll.u32 %s203_s27, 6  ;;  %s490_s27 = scalar_lea.sflag [#allocation3], %s875_s6 }
  0x1a   : > { %s206_s5 = scalar_lea.vmem %s1080_s0, %s639_s28  ;;  %s693_s28 = scalar_lea.vmem %s949_s14, 1024 }
  0x1b   : > { %v209_v1 = vld [vmem:[%s206_s5 + $0x10] sm:$0xff]  ;;  %v207_v2 = vld [vmem:[%s206_s5] sm:$0xff]  ;;  %v210_v3 = vld [vmem:[%s206_s5 + $0x18] sm:$0xff]  ;;  %p694_p11 = scmp.ne.s32.totalorder %s949_s14, %s693_s28 }
  0x1c   : > { %229 = vperm.xlu1 %692, %v209_v1   ;;  %219 = vperm.xlu0 %691, %v207_v2   ;;  %v208_v4 = vld [vmem:[%s206_s5 + $0x8] sm:$0xff]  ;;  %v211_v6 = vld [vmem:[%s206_s5 + $0x20] sm:$0xff]  ;;  %v214_v7 = vld [vmem:[%s206_s5 + $0x38] sm:$0xff] }
  0x1d   : > { %v212_v5 = vld [vmem:[%s206_s5 + $0x28] sm:$0xff]  ;;  %v213_v8 = vld [vmem:[%s206_s5 + $0x30] sm:$0xff]  ;;  %p695_p12 = pnand %p694_p11, %p859_p5  ;;  %s699_s5 = scalar_lea.vmem %s698_s30, 2048 }
  0x1e   : > { %p701_p1 = scmp.lt.s32.totalorder %s699_s5, %s693_s28 }
  0x1f   : > { %p696_p13 = pneg %p695_p12 }
  0x20   : > { %234 = vperm.xlu1 %692, %v210_v3   ;;  %224 = vperm.xlu0 %691, %v208_v4   ;;  %p702_p2 = por %p701_p1, %p700_p0 }
  0x22   : > { %p703_p3 = pnand %p702_p2, %p696_p13 }
  0x24   : > { %244 = vperm.xlu1 %692, %v212_v5   ;;  %239 = vperm.xlu0 %691, %v211_v6  }
  0x28   : > { %254 = vperm.xlu1 %692, %v214_v7   ;;  %249 = vperm.xlu0 %691, %v213_v8  }
  0x9b   : > { %v230_v11 = vpop.permute.xlu1 %229  ;;  %v220_v12 = vpop.permute.xlu0 %219 }
  0x9c   : > { %v265_v13 = vmul.f32 %v880_v9, %v230_v11  ;;  %v263_v14 = vmul.f32 %v880_v9, %v220_v12 }
  0x9e   : > { %v279_v15 = vadd.f32 %v886_v10, %v265_v13  ;;  %v277_v16 = vadd.f32 %v886_v10, %v263_v14 }
  0x9f   : > { %v235_v17 = vpop.permute.xlu1 %234  ;;  %v225_v18 = vpop.permute.xlu0 %224 }
  0xa0   : > { %288 = vst.msk [vmem:[%s892_s12 + $0x10] sm:$0xff] %vm285_vm0, %v279_v15  ;;  %v302_v19 = vsel %vm294_vm1, %v279_v15, 0.0  ;;  %v344_v20 = vrot.slane %v279_v15, 4  ;;  %286 = vst.msk [vmem:[%s892_s12] sm:$0xff] %vm285_vm0, %v277_v16  ;;  %v295_v21 = vsel %vm294_vm1, %v277_v16, 0.0  ;;  %v343_v22 = vrot.slane %v277_v16, 4 }
  0xa1   : > { %v303_v23 = vrot.slane %v302_v19, 4  ;;  %v296_v24 = vrot.slane %v295_v21, 4  ;;  %v266_v25 = vmul.f32 %v880_v9, %v235_v17  ;;  %v264_v26 = vmul.f32 %v880_v9, %v225_v18 }
  0xa2   : > { %v358_v27 = vsel %vm294_vm1, %v344_v20, 0.0  ;;  %v351_v28 = vsel %vm294_vm1, %v343_v22, 0.0 }
  0xa3   : > { %v304_v29 = vadd.f32 %v303_v23, %v302_v19  ;;  %v359_v30 = vrot.slane %v358_v27, 4  ;;  %v297_v31 = vadd.f32 %v296_v24, %v295_v21  ;;  %v352_v32 = vrot.slane %v351_v28, 4  ;;  %v245_v44 = vpop.permute.xlu1 %244  ;;  %v240_v49 = vpop.permute.xlu0 %239 }
  0xa4   : > { %v280_v33 = vadd.f32 %v886_v10, %v266_v25  ;;  %v278_v34 = vadd.f32 %v886_v10, %v264_v26  ;;  %v268_v51 = vmul.f32 %v880_v9, %v245_v44  ;;  %v267_v56 = vmul.f32 %v880_v9, %v240_v49 }
  0xa5   : > { %v305_v35 = vrot.slane %v304_v29, 2  ;;  %v360_v36 = vadd.f32 %v359_v30, %v358_v27  ;;  %v298_v41 = vrot.slane %v297_v31, 2  ;;  %v353_v42 = vadd.f32 %v352_v32, %v351_v28 }
  0xa6   : > { %289 = vst.msk [vmem:[%s892_s12 + $0x18] sm:$0xff] %vm285_vm0, %v280_v33  ;;  %v400_v37 = vsel %vm294_vm1, %v280_v33, 0.0  ;;  %v440_v38 = vrot.slane %v280_v33, 4  ;;  %287 = vst.msk [vmem:[%s892_s12 + $0x8] sm:$0xff] %vm285_vm0, %v278_v34  ;;  %v393_v39 = vsel %vm294_vm1, %v278_v34, 0.0  ;;  %v439_v40 = vrot.slane %v278_v34, 4 }
  0xa7   : > { %v401_v43 = vrot.slane %v400_v37, 4  ;;  %v306_v46 = vadd.f32 %v305_v35, %v304_v29  ;;  %v361_v47 = vrot.slane %v360_v36, 2  ;;  %v394_v48 = vrot.slane %v393_v39, 4  ;;  %v255_v19 = vpop.permute.xlu1 %254  ;;  %v250_v24 = vpop.permute.xlu0 %249 }
  0xa8   : > { %v454_v45 = vsel %vm294_vm1, %v440_v38, 0.0  ;;  %v447_v50 = vsel %vm294_vm1, %v439_v40, 0.0  ;;  %v299_v52 = vadd.f32 %v298_v41, %v297_v31  ;;  %v354_v53 = vrot.slane %v353_v42, 2 }
  0xa9   : > { %v402_v54 = vadd.f32 %v401_v43, %v400_v37  ;;  %v455_v55 = vrot.slane %v454_v45, 4  ;;  %v307_v57 = vrot.slane %v306_v46, 1  ;;  %v362_v58 = vadd.f32 %v361_v47, %v360_v36 }
  0xaa   : > { %v395_v59 = vadd.f32 %v394_v48, %v393_v39  ;;  %v448_v60 = vrot.slane %v447_v50, 4  ;;  %v282_v61 = vadd.f32 %v886_v10, %v268_v51  ;;  %v300_v62 = vrot.slane %v299_v52, 1 }
  0xab   : > { %v917_v63 = vadd.f32 %v354_v53, %v353_v42  ;;  %v403_v0 = vrot.slane %v402_v54, 2  ;;  %v456_v1 = vadd.f32 %v455_v55, %v454_v45  ;;  %v281_v4 = vadd.f32 %v886_v10, %v267_v56 }
  0xac   : > { %291 = vst.msk [vmem:[%s892_s12 + $0x28] sm:$0xff] %vm285_vm0, %v282_v61  ;;  %v407_v2 = vsel %vm294_vm1, %v282_v61, 0.0  ;;  %v441_v3 = vrot.slane %v282_v61, 4  ;;  %v308_v5 = vadd.f32 %v307_v57, %v306_v46  ;;  %v363_v6 = vrot.slane %v362_v58, 1 }
  0xad   : > { %v396_v7 = vrot.slane %v395_v59, 2  ;;  %v449_v8 = vadd.f32 %v448_v60, %v447_v50  ;;  %v408_v11 = vrot.slane %v407_v2, 4  ;;  %290 = vst.msk [vmem:[%s892_s12 + $0x20] sm:$0xff] %vm285_vm0, %v281_v4  ;;  %v309_v13 = vsel %vm294_vm1, %v281_v4, 0.0 }
  0xae   : > { %v461_v12 = vsel %vm294_vm1, %v441_v3, 0.0  ;;  %v345_v14 = vrot.slane %v281_v4, 4  ;;  %v301_v15 = vadd.f32 %v300_v62, %v299_v52  ;;  %v356_v16 = vrot.slane %v917_v63, 1 }
  0xaf   : > { %v404_v17 = vadd.f32 %v403_v0, %v402_v54  ;;  %v457_v18 = vrot.slane %v456_v1, 2  ;;  %v409_v20 = vadd.f32 %v408_v11, %v407_v2  ;;  %v462_v21 = vrot.slane %v461_v12, 4 }
  0xb0   : > { %v310_v22 = vrot.slane %v309_v13, 4  ;;  %v365_v23 = vsel %vm294_vm1, %v345_v14, 0.0  ;;  %v929_v25 = vmul.f32 0.25, %v308_v5  ;;  %v931_v26 = vadd.f32 %v396_v7, %v395_v59 }
  0xb1   : > { %v450_v27 = vrot.slane %v449_v8, 2  ;;  %v366_v28 = vrot.slane %v365_v23, 4  ;;  %v410_v29 = vrot.slane %v409_v20, 2  ;;  %v463_v30 = vadd.f32 %v462_v21, %v461_v12 }
  0xb2   : > { %v311_v31 = vadd.f32 %v310_v22, %v309_v13  ;;  %v270_v32 = vmul.f32 %v880_v9, %v255_v19  ;;  %v405_v33 = vrot.slane %v404_v17, 1  ;;  %v936_v34 = vadd.f32 %v457_v18, %v456_v1 }
  0xb3   : > { %v938_v35 = vadd.f32 %v366_v28, %v365_v23  ;;  %v269_v36 = vmul.f32 %v880_v9, %v250_v24  ;;  %v941_v37 = vadd.f32 %v410_v29, %v409_v20  ;;  %v464_v38 = vrot.slane %v463_v30, 2 }
  0xb4   : > { %v312_v39 = vrot.slane %v311_v31, 2  ;;  %v284_v40 = vadd.f32 %v886_v10, %v270_v32  ;;  %v951_v41 = vadd.f32 %v363_v6, %v362_v58  ;;  %v953_v42 = vmul.f32 0.25, %v301_v15 }
  0xb5   : > { %v398_v9 = vrot.slane %v931_v26, 1  ;;  %v283_v43 = vadd.f32 %v886_v10, %v269_v36  ;;  %v957_v44 = vadd.f32 %v450_v27, %v449_v8  ;;  %v368_v46 = vrot.slane %v938_v35, 2 }
  0xb6   : > { %v959_v45 = vadd.f32 %v312_v39, %v311_v31  ;;  %293 = vst.msk [vmem:[%s892_s12 + $0x38] sm:$0xff] %vm285_vm0, %v284_v40  ;;  %v414_v47 = vsel %vm294_vm1, %v284_v40, 0.0  ;;  %v965_v48 = vadd.f32 %v464_v38, %v463_v30  ;;  %v442_v50 = vrot.slane %v284_v40, 4 }
  0xb7   : > { %v415_v49 = vrot.slane %v414_v47, 4  ;;  %292 = vst.msk [vmem:[%s892_s12 + $0x30] sm:$0xff] %vm285_vm0, %v283_v43  ;;  %v316_v10 = vsel %vm294_vm1, %v283_v43, 0.0  ;;  %v406_v51 = vadd.f32 %v405_v33, %v404_v17  ;;  %v459_v52 = vrot.slane %v936_v34, 1 }
  0xb8   : > { %v412_v53 = vrot.slane %v941_v37, 1  ;;  %v317_v54 = vrot.slane %v316_v10, 4 }
  0xb9   : > { %706 = shalt.err (!%p703_p3)
}
  0xba   : > { %s707_s7 = scalar_lea.hbm %s947_s23, 1024  ;;  %s711_s10 = scalar_lea.hbm %s1083_s3, 2048 }
  0xbb   : > { %p708_p4 = scmp.ne.s32.totalorder %s947_s23, %s707_s7  ;;  %p712_p9 = scmp.lt.u32.totalorder %s947_s23, %s1083_s3 }
  0xbc   : > { %p713_p10 = scmp.lt.u32.totalorder %s711_s10, %s707_s7  ;;  %p715_p12 = scmp.lt.u32.totalorder %s707_s7, %s947_s23 }
  0xbd   : > { %p709_p7 = pnand %p708_p4, %p859_p5 }
  0xbe   : > { %p714_p11 = por %p713_p10, %p712_p9 }
  0xbf   : > { %p710_p8 = pneg %p709_p7 }
  0xc0   : > { %p716_p13 = por %p715_p12, %p714_p11 }
  0xc2   : > { %p717_p0 = pnand %p716_p13, %p710_p8 }
  0xc4   : > { %720 = shalt.err (!%p717_p0)
}
  0xc5   : > { %s791_s13 = smov 128   ;;  %s792_s20 = smov 8   ;;  %v399_v55 = vadd.f32 %v398_v9, %v931_v26  ;;  %vm333_vm3 = vcmask 1042434   ;;  %v416_v56 = vadd.f32 %v415_v49, %v414_v47  ;;  %v468_v57 = vsel %vm294_vm1, %v442_v50, 0.0 }
  0xc6   : > { %642 = dma.vmem_to_hbm [thread:$0]  (%p859_p5), %s949_s14, 1024, %s947_s23, %s490_s27, %s791_s13, %s791_s13, %s792_s20   ;;  %v346_v58 = vrot.slane %v283_v43, 4  ;;  %v452_v59 = vrot.slane %v957_v44, 1  ;;  %v314_v60 = vrot.slane %v959_v45, 1  ;;  %v369_v61 = vadd.f32 %v368_v46, %v938_v35 }
  0xc7   : > { %vm335_vm4 = vcmask 1043459   ;;  %v469_v62 = vrot.slane %v468_v57, 4  ;;  %v466_v0 = vrot.slane %v965_v48, 1  ;;  %v417_v1 = vrot.slane %v416_v56, 2  ;;  %s623_s14 = sshll.u32 %s875_s6, 4  ;;  %s641_s23 = sshll.u32 %s842_s19, 8 }
  0xc8   : > { %v318_v2 = vadd.f32 %v317_v54, %v316_v10  ;;  %v372_v3 = vsel %vm294_vm1, %v346_v58, 0.0  ;;  %v422_v4 = vmul.f32 0.25, %v406_v51  ;;  %v460_v5 = vadd.f32 %v459_v52, %v936_v34  ;;  %s201_s22 = scalar_lea.vmem [#allocation4], %s623_s14  ;;  %s1032_s19 = scalar_lea.hbm %s1084_s4, %s641_s23 }
  0xc9   : > { %v413_v6 = vadd.f32 %v412_v53, %v941_v37  ;;  %v470_v7 = vadd.f32 %v469_v62, %v468_v57  ;;  %v421_v8 = vmul.f32 0.25, %v399_v55  ;;  %v418_v11 = vadd.f32 %v417_v1, %v416_v56  ;;  %s524_s27 = sshll.u32 %s201_s22, 4  ;;  %s495_s30 = scalar_lea.sflag [#allocation5], %s875_s6  ;;  %s1034_s27 = int_to_ptr.vmem [resolvable:$true] %s524_s27 }
  0xca   : > { %v319_v12 = vrot.slane %v318_v2, 2  ;;  %v373_v13 = vrot.slane %v372_v3, 4  ;;  %v453_v14 = vadd.f32 %v452_v59, %v957_v44  ;;  %v315_v15 = vadd.f32 %v314_v60, %v959_v45  ;;  %s721_s5 = scalar_lea.vmem %s1034_s27, 256  ;;  %s793_s7 = smov [#allocation4]  }
  0xcb   : > { %v370_v17 = vrot.slane %v369_v61, 1  ;;  %v471_v18 = vrot.slane %v470_v7, 2  ;;  %v467_v19 = vadd.f32 %v466_v0, %v965_v48  ;;  %v419_v20 = vrot.slane %v418_v11, 1  ;;  %p722_p1 = scmp.ne.s32.totalorder %s1034_s27, %s721_s5  ;;  %s725_s8 = sshll.u32 %s793_s7, 4  ;;  %s726_s8 = int_to_ptr.vmem [resolvable:$false] %s725_s8 }
  0xcc   : > { %v320_v21 = vadd.f32 %v319_v12, %v318_v2  ;;  %v374_v22 = vadd.f32 %v373_v13, %v372_v3  ;;  %v357_v23 = vadd.f32 %v356_v16, %v917_v63  ;;  %v476_v24 = vmul.f32 0.25, %v460_v5  ;;  %s727_s9 = scalar_lea.vmem %s726_s8, 512  ;;  %p728_p4 = scmp.lt.s32.totalorder %s1034_s27, %s726_s8 }
  0xcd   : > { %v423_v26 = vmul.f32 0.25, %v413_v6  ;;  %v472_v27 = vadd.f32 %v471_v18, %v470_v7  ;;  %v429_v28 = vsel %vm331_vm2, %v422_v4, %v421_v8  ;;  %v420_v29 = vadd.f32 %v419_v20, %v418_v11  ;;  %p723_p2 = pnand %p722_p1, %p859_p5  ;;  %p729_p7 = scmp.lt.s32.totalorder %s727_s9, %s721_s5 }
  0xce   : > { %v321_v30 = vrot.slane %v320_v21, 1  ;;  %v375_v31 = vrot.slane %v374_v22, 2  ;;  %v475_v32 = vmul.f32 0.25, %v453_v14  ;;  %v325_v33 = vmul.f32 0.25, %v315_v15 }
  0xcf   : > { %v371_v34 = vadd.f32 %v370_v17, %v369_v61  ;;  %v473_v35 = vrot.slane %v472_v27, 1  ;;  %v477_v36 = vmul.f32 0.25, %v467_v19  ;;  %v424_v37 = vmul.f32 0.25, %v420_v29  ;;  %p724_p3 = pneg %p723_p2  ;;  %p730_p8 = por %p729_p7, %p728_p4 }
  0xd0   : > { %v322_v38 = vadd.f32 %v321_v30, %v320_v21  ;;  %v376_v39 = vadd.f32 %v375_v31, %v374_v22  ;;  %v380_v63 = vmul.f32 0.25, %v951_v41  ;;  %v332_v16 = vsel %vm331_vm2, %v929_v25, %v953_v42 }
  0xd1   : > { %v430_v40 = vsel %vm333_vm3, %v423_v26, %v429_v28  ;;  %v474_v9 = vadd.f32 %v473_v35, %v472_v27  ;;  %v379_v43 = vmul.f32 0.25, %v357_v23  ;;  %v483_v47 = vsel %vm331_vm2, %v476_v24, %v475_v32  ;;  %p731_p9 = pnand %p730_p8, %p724_p3 }
  0xd2   : > { %v431_v44 = vsel %vm335_vm4, %v424_v37, %v430_v40  ;;  %v326_v45 = vmul.f32 0.25, %v322_v38  ;;  %v377_v46 = vrot.slane %v376_v39, 1  ;;  %v334_v48 = vsel %vm333_vm3, %v325_v33, %v332_v16 }
  0xd3   : > { %v381_v49 = vmul.f32 0.25, %v371_v34  ;;  %629 = vst.msk [vmem:[%s201_s22 + $0x8] sm:$0xf] %vm294_vm1, %v431_v44  ;;  %v478_v41 = vmul.f32 0.25, %v474_v9  ;;  %v484_v25 = vsel %vm333_vm3, %v477_v36, %v483_v47  ;;  %v387_v51 = vsel %vm331_vm2, %v380_v63, %v379_v43 }
  0xd4   : > { %v336_v42 = vsel %vm335_vm4, %v326_v45, %v334_v48  ;;  %v378_v50 = vadd.f32 %v377_v46, %v376_v39 }
  0xd5   : > { %v485_v10 = vsel %vm335_vm4, %v478_v41, %v484_v25  ;;  %338 = vst.msk [vmem:[%s201_s22] sm:$0xf] %vm294_vm1, %v336_v42  ;;  %v388_v53 = vsel %vm333_vm3, %v381_v49, %v387_v51 }
  0xd6   : > { %630 = vst.msk [vmem:[%s201_s22 + $0xc] sm:$0xf] %vm294_vm1, %v485_v10  ;;  %v382_v52 = vmul.f32 0.25, %v378_v50 }
  0xd8   : > { %v389_v54 = vsel %vm335_vm4, %v382_v52, %v388_v53 }
  0xd9   : > { %628 = vst.msk [vmem:[%s201_s22 + $0x4] sm:$0xf] %vm294_vm1, %v389_v54 }
  0xda   : > { %734 = shalt.err (!%p731_p9)
}
  0xdb   : > { %s735_s10 = scalar_lea.hbm %s1032_s19, 256  ;;  %s739_s13 = scalar_lea.hbm %s1084_s4, 512 }
  0xdc   : > { %p736_p10 = scmp.ne.s32.totalorder %s1032_s19, %s735_s10  ;;  %p740_p13 = scmp.lt.u32.totalorder %s1032_s19, %s1084_s4 }
  0xdd   : > { %p741_p0 = scmp.lt.u32.totalorder %s739_s13, %s735_s10  ;;  %p743_p2 = scmp.lt.u32.totalorder %s735_s10, %s1032_s19 }
  0xde   : > { %p737_p11 = pnand %p736_p10, %p859_p5 }
  0xdf   : > { %p742_p1 = por %p741_p0, %p740_p13 }
  0xe0   : > { %p738_p12 = pneg %p737_p11 }
  0xe1   : > { %p744_p3 = por %p743_p2, %p742_p1 }
  0xe3   : > { %p745_p4 = pnand %p744_p3, %p738_p12 }
  0xe5   : > { %748 = shalt.err (!%p745_p4)
}
  0xe6   : > { %s794_s22 = smov 64   ;;  %s795_s23 = smov 4  }
  0xe7   : > { %643 = dma.vmem_to_hbm [thread:$0]  (%p859_p5), %s1034_s27, 256, %s1032_s19, %s495_s30, %s794_s22, %s794_s22, %s795_s23  }
  0xe8 PF: > { %p653_p7 = scmp.ge.s32.totalorder %s787_s18, 2  ;;  %s539_s28 = sand.u32 1, %s775_s15  }
  0xe9   : > { %s540_s29 = scalar_lea.sflag [#allocation3], %s539_s28 }
  0xea   : > { %p647_p8 = pnand %p653_p7, %p863_p6 }
  0xec   : > { %766 = dma.done.wait (!%p647_p8), %s540_s29, 1024  }
  0xed   : > { %768 = vsyncadd (!%p647_p8), %s540_s29, 4294966272  ;;  %s549_s5 = scalar_lea.sflag [#allocation5], %s539_s28 }
  0xee   : > { %770 = dma.done.wait (!%p647_p8), %s549_s5, 256  }
  0xef   : > { %772 = vsyncadd (!%p647_p8), %s549_s5, 4294967040  ;;  %p18_p5 = scmp.ge.s32.totalorder %s846_s21, 4   ;;  %s1087_s15 = smov %s779_s16 }
  0xf0   : > { %s1088_s16 = smov %s783_s17  ;;  %s1089_s17 = smov %s857_s24 }
  0xf1   : > { %s1090_s18 = smov %s846_s21  ;;  %20 = sbr.rel (!%p18_p5) target bundleno = 5 (0x5), region = 87 }
  0xf8   :  { %554 = vsyncpa [#allocation3], 1 }
  0xf9   :  { %556 = vsyncpa [#allocation3 + $0x1], 1 }
  0xfa   :  { %557 = vsyncpa [#allocation5], 1 }
  0xfb   :  { %559 = vsyncpa [#allocation5 + $0x1], 1 }

</bundles_post_ra>
